<compile_context>
chip_gen: v6e
topology: v6e:2x2x1
jax: 0.10.0
libtpu: 0.0.40
codegen_flags: <defaults>
</compile_context>

<pallas_src>
import jax
import jax.numpy as jnp
from jax.experimental import pallas as pl
from jax.experimental.pallas import tpu as pltpu


LANE = 128
SUBLANE = 8
SLAB_W = 8 * LANE                 # 1024 lanes: lane-dense stores, fat DMAs
TILE_BYTES = 4 << 20              # 4 MiB per tile (in+out double-buffered ~16 MiB)
VMEM_LIMIT_BYTES = 32 << 20       # explicit scoped-VMEM budget, safe v5e..v7x
SMALL_FALLBACK_BYTES = 256 << 10  # below this, plain XLA beats a kernel launch


def _neg_scale_kernel(g_ref, lam_ref, o_ref):
    # dx = -lambda * g. lambda arrives as an SMEM f32 scalar; multiply in f32
    # (exact lambda even for bf16 grads), then cast back to the grad dtype.
    neg_lam = -lam_ref[0]
    o_ref[...] = (g_ref[...].astype(jnp.float32) * neg_lam).astype(o_ref.dtype)


def _neg_scale(g, lam):
    """dx = -lambda * g via a tiled, pipelined elementwise Pallas kernel."""
    orig_shape = g.shape
    dtype = g.dtype
    n = g.size
    itemsize = jnp.dtype(dtype).itemsize

    lam_f32 = lam.astype(jnp.float32)

    # Tiny gradients: fused XLA elementwise op is already at roofline.
    if n * itemsize <= SMALL_FALLBACK_BYTES:
        return (-lam_f32 * g.astype(jnp.float32)).astype(dtype)

    flat = jnp.ravel(g)
    rows = n // SLAB_W
    head_n = rows * SLAB_W
    rem = n - head_n
    head = flat[:head_n].reshape(rows, SLAB_W)

    # Dtype-aware sublane pack factor: 8 (f32), 16 (bf16/f16), 32 (int8/fp8).
    pack = max(SUBLANE, 32 // itemsize)
    # Max rows per tile at the TILE_BYTES budget, rounded down to pack.
    tile_rows_max = max(pack, (TILE_BYTES // (SLAB_W * itemsize)) // pack * pack)
    # Cap at ~rows/2 (pack-aligned) so there are >=2 grid blocks when possible,
    # letting the parallel axis split across TensorCores on megacore chips.
    half_rows = pl.cdiv(pl.cdiv(rows, 2), pack) * pack
    tr = min(tile_rows_max, max(pack, half_rows))
    grid = (pl.cdiv(rows, tr),)

    lam_arr = jnp.reshape(lam_f32, (1,))

    head_out = pl.pallas_call(
        _neg_scale_kernel,
        out_shape=jax.ShapeDtypeStruct(head.shape, head.dtype),
        grid_spec=pltpu.PrefetchScalarGridSpec(
            num_scalar_prefetch=0,
            grid=grid,
            in_specs=[
                pl.BlockSpec((tr, SLAB_W), lambda i: (i, 0)),
                pl.BlockSpec(memory_space=pltpu.MemorySpace.SMEM),
            ],
            out_specs=pl.BlockSpec((tr, SLAB_W), lambda i: (i, 0)),
        ),
        compiler_params=pltpu.CompilerParams(
            dimension_semantics=("parallel",),
            vmem_limit_bytes=VMEM_LIMIT_BYTES,
        ),
        # Update the gradient buffer in place (saves an HBM allocation).
        input_output_aliases={0: 0},
    )(head, lam_arr)

    out_flat = jnp.ravel(head_out)
    if rem:
        # <1024-element tail: compute directly in XLA (no pad/slice HBM passes).
        tail = flat[head_n:]
        tail_out = (-lam_f32 * tail.astype(jnp.float32)).astype(dtype)
        out_flat = jnp.concatenate([out_flat, tail_out])
    return out_flat.reshape(orig_shape)


@jax.custom_vjp
def gradient_reversal(x, lambda_):
    # Forward: identity (equivalent to PyTorch's x.clone() for immutable arrays).
    return x


def _grl_fwd(x, lambda_):
    return x, lambda_


def _grl_bwd(lambda_, g):
    dx = _neg_scale(g, lambda_)
    # PyTorch returns (dx, None): no gradient w.r.t. lambda.
    return (dx, jnp.zeros_like(lambda_))


gradient_reversal.defvjp(_grl_fwd, _grl_bwd)


class GradientReversal:
    """JAX/Pallas equivalent of the PyTorch GradientReversal module."""

    def __init__(self, lambda_=1):
        self.lambda_ = float(lambda_)

    def __call__(self, x):
        lam = jnp.asarray(self.lambda_, dtype=jnp.float32)
        return gradient_reversal(x, lam)


if __name__ == "__main__":
    key = jax.random.PRNGKey(0)
    k1, k2, k3 = jax.random.split(key, 3)

    # Spec-consistent small input: NCHW batch=2, channels=4, spatial=16x16.
    x = jax.random.normal(k1, (2, 4, 16, 16), dtype=jnp.float32)
    grl = GradientReversal(lambda_=1.0)

    # Forward pass: identity.
    y = jax.block_until_ready(grl(x))
    assert y.shape == x.shape and y.dtype == x.dtype
    assert bool(jnp.allclose(y, x)), "forward must be identity"

    # Small gradient -> XLA fallback path.
    g_small = jax.block_until_ready(jax.grad(lambda z: jnp.sum(grl(z)))(x))
    assert bool(jnp.allclose(g_small, -1.0 * jnp.ones_like(x)))

    # Larger f32 gradient -> Pallas kernel path (2 MiB, grid splits in 2).
    grl2 = GradientReversal(lambda_=0.5)
    x_big = jax.random.normal(k2, (2, 8, 128, 128), dtype=jnp.float32)
    g_big = jax.block_until_ready(jax.grad(lambda z: jnp.sum(grl2(z)))(x_big))
    assert bool(jnp.allclose(g_big, -0.5 * jnp.ones_like(x_big)))

    # bf16 gradient through the kernel (dtype-aware 16-row sublane packing).
    x_bf = jax.random.normal(k2, (2, 8, 128, 128), dtype=jnp.bfloat16)
    _, vjp_bf = jax.vjp(grl2, x_bf)
    (g_bf,) = vjp_bf(jnp.ones_like(x_bf))
    g_bf = jax.block_until_ready(g_bf)
    assert g_bf.dtype == jnp.bfloat16
    assert bool(jnp.allclose(g_bf.astype(jnp.float32),
                             -0.5 * jnp.ones(x_bf.shape, jnp.float32)))

    # Ragged size (tail < 1024 handled in XLA, head in the kernel) and a
    # non-uniform upstream cotangent.
    grl3 = GradientReversal(lambda_=0.7)
    x_rag = jax.random.normal(k3, (3, 5, 127, 129), dtype=jnp.float32)
    cot = jax.random.normal(jax.random.PRNGKey(7), x_rag.shape, jnp.float32)
    _, vjp_rag = jax.vjp(grl3, x_rag)
    (g_rag,) = vjp_rag(cot)
    g_rag = jax.block_until_ready(g_rag)
    assert bool(jnp.allclose(g_rag, jnp.float32(-0.7) * cot, rtol=1e-6, atol=1e-6))

    print("KERNEL_OK")
</pallas_src>

<mosaic_0001>
module attributes {stable_mosaic.version = 11 : i64} {
  func.func @_neg_scale_kernel(%arg0: i32, %arg1: memref<128x1024xf32, #tpu.memory_space<vmem>>, %arg2: memref<1xf32, #tpu.memory_space<smem>>, %arg3: memref<128x1024xf32, #tpu.memory_space<vmem>>) attributes {dimension_semantics = [#tpu.dimension_semantics<parallel>], iteration_bounds = array<i64: 2>, scalar_prefetch = 0 : i64, scratch_operands = 0 : i64, tpu.core_type = #tpu.core_type<tc>, window_params = [{transform_indices = @transform_0, window_bounds = array<i64: 128, 1024>}, {transform_indices = @transform_1, window_bounds = array<i64: 1>}, {transform_indices = @transform_2, window_bounds = array<i64: 128, 1024>}]} {
    %c0 = arith.constant 0 : index
    %0 = memref.load %arg2[%c0] : memref<1xf32, #tpu.memory_space<smem>>
    %cst = arith.constant 0.000000e+00 : f32
    %1 = arith.subf %cst, %0 : f32
    %c0_0 = arith.constant 0 : index
    %c0_1 = arith.constant 0 : index
    %2 = vector.load %arg1[%c0_0, %c0_1] : memref<128x1024xf32, #tpu.memory_space<vmem>>, vector<128x1024xf32>
    %3 = vector.broadcast %1 : f32 to vector<128x1024xf32>
    %4 = arith.mulf %2, %3 : vector<128x1024xf32>
    %c0_2 = arith.constant 0 : index
    %c0_3 = arith.constant 0 : index
    %5 = vector.load %arg3[%c0_2, %c0_3] : memref<128x1024xf32, #tpu.memory_space<vmem>>, vector<128x1024xf32>
    tpu.vector_store %arg3[%c0_2, %c0_3], %4 {strides = array<i32>} : memref<128x1024xf32, #tpu.memory_space<vmem>>, vector<128x1024xf32>,
    return
  }
  func.func @transform_0(%arg0: i32) -> (i32, i32) {
    %c0_i32 = arith.constant 0 : i32
    %c0_i32_0 = arith.constant 0 : i32
    return %arg0, %c0_i32 : i32, i32
  }
  func.func @transform_1(%arg0: i32) -> i32 {
    %c0_i32 = arith.constant 0 : i32
    %c0_i32_0 = arith.constant 0 : i32
    return %c0_i32 : i32
  }
  func.func @transform_2(%arg0: i32) -> (i32, i32) {
    %c0_i32 = arith.constant 0 : i32
    %c0_i32_0 = arith.constant 0 : i32
    return %arg0, %c0_i32 : i32, i32
  }
}

</mosaic_0001>

<bundles_post_ra>
// kernel: tpu_custom_call.1
= control target key start
LH: loop header
LB: loop body
LE: loop exit
PB: predicated region body
PF: predicated region fallthrough
CT: control target
= control target key end

     0   :  { %s1378_s0 = inlined_call_operand.hbm [shape: f32[256,1024], index: 0, kind: input, shape index: {}, may-alias: {0,2}]   ;;  %s1379_s1 = inlined_call_operand.<no memory space> [shape: f32[1], index: 1, kind: input, shape index: {}]   ;;  %s1380_s2 = inlined_call_operand.hbm [shape: f32[256,1024], index: 2, kind: output, shape index: {}, may-alias: {0,2}]  }
   0x1   :  { %7 = sst [smem:[#allocation2]] %s1379_s1 }
   0x2   :  { %8 = vsyncpa [#allocation4], 0 }
   0x3   :  { %10 = vsyncpa [#allocation4 + $0x1], 0 }
   0x4   :  { %11 = vsyncpa [#allocation5], 0 }
   0x5   :  { %13 = vsyncpa [#allocation5 + $0x1], 0  ;;  %s829_s11 = smov 0   ;;  %s831_s12 = smov 0  }
   0x6   :  { %s833_s13 = smov 0   ;;  %s835_s14 = smov 0  }
   0x7 LB: > { %s850_s1 = sadd.s32 4294967295, %s803_s14   ;;  %s641_s15 = sadd.s32 4294967294, %s803_s14   ;;  %s803_s14 = sphi %s835_s14, %s1395_s14   ;;  %s799_s13 = sphi %s833_s13, %s1394_s13   ;;  %s795_s12 = sphi %s831_s12, %s1393_s12   ;;  %s791_s11 = sphi %s829_s11, %s1392_s11  }
   0x8   : > { %s854_s16 = sadd.s32 1, %s803_s14   ;;  %s26_s17 = sadd.s32 1, %s799_s13 }
   0x9   : > { %s23_s18 = ssub.s32 %s803_s14, %s854_s16  ;;  %p33_p0 = scmp.ne.s32.totalorder %s799_s13, %s795_s12 }
   0xa   : > { %p24_p1 = scmp.eq.s32.totalorder %s23_s18, 0  ;;  %p34_p2 = scmp.eq.s32.totalorder %s803_s14, 0 }
   0xb   : > { %p39_p3 = scmp.ne.s32.totalorder %s795_s12, %s791_s11  ;;  %p40_p4 = scmp.eq.s32.totalorder %s850_s1, 0 }
   0xc   : > { %s866_s19 = scalar_select %p24_p1, %s799_s13, %s26_s17  }
   0xd   : > { %p868_p5 = por %p34_p2, %p33_p0  ;;  %p872_p6 = por %p40_p4, %p39_p3 }
   0xe   : > { %p84_p7 = scmp.eq.s32.totalorder %s850_s1, 1  ;;  %p90_p8 = scmp.eq.s32.totalorder %s641_s15, 1 }
   0xf   : > { %s1384_s21 = scalar_select %p872_p6, 1, 0 }
  0x10   : > { %p673_p10 = scmp.lt.s32.totalorder %s803_s14, 2  ;;  %p879_p11 = por %p84_p7, %p33_p0 }
  0x11   : > { %p883_p12 = por %p90_p8, %p39_p3  ;;  %s113_s24 = sand.u32 1, %s799_s13  }
  0x12   : > { %s1385_s22 = scalar_select %p879_p11, 1, 0 }
  0x13   : > { %s1386_s23 = scalar_select %p883_p12, 1, 0 }
  0x14   : > { %s658_s25 = sshll.u32 %s803_s14, 14  ;;  %s644_s26 = sshll.u32 %s113_s24, 10 }
  0x15   : > { %s892_s29 = scalar_lea.hbm %s1378_s0, %s658_s25  ;;  %s117_s30 = scalar_lea.vmem [#allocation3], %s644_s26 }
  0x16   : > { %s125_s3 = sshll.u32 %s117_s30, 4  ;;  %p896_p13 = pnand %p673_p10, %p868_p5  ;;  %s900_s3 = int_to_ptr.vmem [resolvable:$true] %s125_s3 }
  0x17   : > { %s902_s5 = scalar_lea.sflag [#allocation4], %s113_s24  ;;  %s711_s6 = scalar_lea.hbm %s892_s29, 16384 }
  0x18   : > { %p712_p0 = scmp.ne.s32.totalorder %s892_s29, %s711_s6  ;;  %p713_p1 = pneg %p896_p13 }
  0x19   : > { %s716_s9 = scalar_lea.hbm %s1378_s0, 32768  ;;  %p717_p4 = scmp.lt.s32.totalorder %s892_s29, %s1378_s0 }
  0x1a   : > { %p714_p2 = pnand %p713_p1, %p712_p0  ;;  %p718_p5 = scmp.lt.s32.totalorder %s716_s9, %s711_s6 }
  0x1c   : > { %p715_p3 = pneg %p714_p2  ;;  %p719_p7 = por %p718_p5, %p717_p4 }
  0x1e   : > { %p720_p8 = pnand %p719_p7, %p715_p3 }
  0x20   : > { %723 = shalt.err (!%p720_p8)
}
  0x21   : > { %s724_s17 = scalar_lea.vmem %s900_s3, 16384  ;;  %s805_s18 = smov [#allocation3]  }
  0x22   : > { %p725_p10 = scmp.ne.s32.totalorder %s900_s3, %s724_s17  ;;  %s729_s20 = sshll.u32 %s805_s18, 4  ;;  %s730_s20 = int_to_ptr.vmem [resolvable:$false] %s729_s20 }
  0x23   : > { %s731_s24 = scalar_lea.vmem %s730_s20, 32768  ;;  %p732_p2 = scmp.lt.s32.totalorder %s900_s3, %s730_s20 }
  0x24   : > { %p727_p9 = pnand %p725_p10, %p713_p1  ;;  %p733_p12 = scmp.lt.s32.totalorder %s731_s24, %s724_s17 }
  0x26   : > { %p728_p0 = pneg %p727_p9  ;;  %p734_p11 = por %p733_p12, %p732_p2 }
  0x28   : > { %p735_p6 = pnand %p734_p11, %p728_p0 }
  0x2a   : > { %738 = shalt.err (!%p735_p6)
}
  0x2b   : > { %s806_s25 = smov 1024   ;;  %s807_s26 = smov 64  }
  0x2c   : > { %668 = dma.hbm_to_vmem [thread:$0]  (!%p896_p13), %s892_s29, 16384, %s900_s3, %s902_s5, %s806_s25, %s806_s25, %s807_s26  }
  0x2d   : > { %p648_p9 = scmp.ge.s32.totalorder %s803_s14, 1  ;;  %p133_p1 = scmp.lt.s32.totalorder %s803_s14, 3 }
  0x2f   : > { %p134_p3 = pnand %p648_p9, %p133_p1 }
  0x30   : > { %s926_s27 = sand.u32 (!%p134_p3), 1, %s795_s12   ;;  %p1388_p6 = scmp.ne.s32.totalorder (!%p134_p3), %s1384_s21, 0 }
  0x31   : > { %137 = sbr.rel (%p134_p3) target bundleno = 143 (0x8f), region = 28  ;;  %s649_s28 = sshll.u32 (!%p134_p3), %s926_s27, 10 }
  0x32   : > { %s140_s30 = scalar_lea.sflag (!%p134_p3), [#allocation4], %s926_s27  ;;  %s932_s6 = scalar_lea.vmem (!%p134_p3), [#allocation3], %s649_s28 }
  0x36   : > { %782 = dma.done.wait (%p1388_p6), %s140_s30, 16384  }
  0x37   : > { %784 = vsyncadd (%p1388_p6), %s140_s30, 4294950912  ;;  %s166_s29 = sld [smem:[#allocation2]]  ;;  %v168_v0 = vld [vmem:[%s932_s6] sm:$0xff]  ;;  %v169_v1 = vld [vmem:[%s932_s6 + $0x8] sm:$0xff]  ;;  %s965_s21 = scalar_lea.vmem [#allocation6], %s649_s28 }
  0x38   : > { %v170_v2 = vld [vmem:[%s932_s6 + $0x10] sm:$0xff]  ;;  %v171_v3 = vld [vmem:[%s932_s6 + $0x18] sm:$0xff]  ;;  %v172_v4 = vld [vmem:[%s932_s6 + $0x20] sm:$0xff]  ;;  %s660_s4 = sshll.u32 %s850_s1, 14  ;;  %s568_s5 = sshll.u32 %s965_s21, 4  ;;  %s1325_s5 = int_to_ptr.vmem [resolvable:$true] %s568_s5 }
  0x39   : > { %v173_v5 = vld [vmem:[%s932_s6 + $0x28] sm:$0xff]  ;;  %v174_v7 = vld [vmem:[%s932_s6 + $0x30] sm:$0xff]  ;;  %v175_v8 = vld [vmem:[%s932_s6 + $0x38] sm:$0xff]  ;;  %s1323_s8 = scalar_lea.hbm %s1380_s2, %s660_s4  ;;  %s554_s9 = scalar_lea.sflag [#allocation5], %s926_s27 }
  0x3a   : > { %v176_v9 = vld [vmem:[%s932_s6 + $0x40] sm:$0xff]  ;;  %v177_v14 = vld [vmem:[%s932_s6 + $0x48] sm:$0xff]  ;;  %v178_v15 = vld [vmem:[%s932_s6 + $0x50] sm:$0xff]  ;;  %s739_s10 = scalar_lea.vmem %s1325_s5, 16384  ;;  %p1389_p12 = scmp.ne.s32.totalorder %s1385_s22, 0 }
  0x3b   : > { %v179_v16 = vld [vmem:[%s932_s6 + $0x58] sm:$0xff]  ;;  %v180_v21 = vld [vmem:[%s932_s6 + $0x60] sm:$0xff]  ;;  %v181_v22 = vld [vmem:[%s932_s6 + $0x68] sm:$0xff]  ;;  %p740_p11 = scmp.ne.s32.totalorder %s1325_s5, %s739_s10  ;;  %s808_s15 = smov [#allocation6]  }
  0x3c   : > { %v182_v23 = vld [vmem:[%s932_s6 + $0x70] sm:$0xff]  ;;  %v183_v28 = vld [vmem:[%s932_s6 + $0x78] sm:$0xff]  ;;  %v184_v29 = vld [vmem:[%s932_s6 + $0x80] sm:$0xff]  ;;  %s743_s17 = sshll.u32 %s808_s15, 4  ;;  %s744_s17 = int_to_ptr.vmem [resolvable:$false] %s743_s17 }
  0x3d   : > { %s167_s3 = ssub.f32 0.0, %s166_s29  ;;  %v185_v30 = vld [vmem:[%s932_s6 + $0x88] sm:$0xff]  ;;  %v186_v35 = vld [vmem:[%s932_s6 + $0x90] sm:$0xff]  ;;  %v187_v36 = vld [vmem:[%s932_s6 + $0x98] sm:$0xff]  ;;  %p741_p13 = pnand %p740_p11, %p1389_p12 }
  0x3e   : > { %v188_v37 = vld [vmem:[%s932_s6 + $0xa0] sm:$0xff]  ;;  %v189_v42 = vld [vmem:[%s932_s6 + $0xa8] sm:$0xff]  ;;  %v190_v43 = vld [vmem:[%s932_s6 + $0xb0] sm:$0xff]  ;;  %s745_s18 = scalar_lea.vmem %s744_s17, 32768  ;;  %p746_p5 = scmp.lt.s32.totalorder %s1325_s5, %s744_s17 }
  0x3f   : > { %v944_v6 = vstv %s167_s3  ;;  %v191_v44 = vld [vmem:[%s932_s6 + $0xb8] sm:$0xff]  ;;  %v192_v49 = vld [vmem:[%s932_s6 + $0xc0] sm:$0xff]  ;;  %v193_v50 = vld [vmem:[%s932_s6 + $0xc8] sm:$0xff]  ;;  %p742_p4 = pneg %p741_p13  ;;  %p747_p7 = scmp.lt.s32.totalorder %s745_s18, %s739_s10 }
  0x40   : > { %v297_v10 = vmul.f32 %v944_v6, %v168_v0  ;;  %v298_v11 = vmul.f32 %v944_v6, %v169_v1  ;;  %v299_v12 = vmul.f32 %v944_v6, %v170_v2  ;;  %v300_v13 = vmul.f32 %v944_v6, %v171_v3  ;;  %v194_v51 = vld [vmem:[%s932_s6 + $0xd0] sm:$0xff]  ;;  %v195_v55 = vld [vmem:[%s932_s6 + $0xd8] sm:$0xff]  ;;  %v196_v56 = vld [vmem:[%s932_s6 + $0xe0] sm:$0xff] }
  0x41   : > { %v301_v17 = vmul.f32 %v944_v6, %v172_v4  ;;  %v302_v18 = vmul.f32 %v944_v6, %v173_v5  ;;  %v303_v19 = vmul.f32 %v944_v6, %v174_v7  ;;  %v304_v20 = vmul.f32 %v944_v6, %v175_v8  ;;  %v197_v57 = vld [vmem:[%s932_s6 + $0xe8] sm:$0xff]  ;;  %v198_v61 = vld [vmem:[%s932_s6 + $0xf0] sm:$0xff]  ;;  %v199_v62 = vld [vmem:[%s932_s6 + $0xf8] sm:$0xff]  ;;  %p748_p8 = por %p747_p7, %p746_p5 }
  0x42   : > { %425 = vst [vmem:[%s965_s21] sm:$0xff] %v297_v10  ;;  %426 = vst [vmem:[%s965_s21 + $0x8] sm:$0xff] %v298_v11  ;;  %v305_v24 = vmul.f32 %v944_v6, %v176_v9  ;;  %v306_v25 = vmul.f32 %v944_v6, %v177_v14  ;;  %v307_v26 = vmul.f32 %v944_v6, %v178_v15  ;;  %v200_v63 = vld [vmem:[%s932_s6 + $0x100] sm:$0xff]  ;;  %v201_v3 = vld [vmem:[%s932_s6 + $0x108] sm:$0xff] }
  0x43   : > { %427 = vst [vmem:[%s965_s21 + $0x10] sm:$0xff] %v299_v12  ;;  %428 = vst [vmem:[%s965_s21 + $0x18] sm:$0xff] %v300_v13  ;;  %v308_v27 = vmul.f32 %v944_v6, %v179_v16  ;;  %v309_v31 = vmul.f32 %v944_v6, %v180_v21  ;;  %v310_v32 = vmul.f32 %v944_v6, %v181_v22  ;;  %v202_v4 = vld [vmem:[%s932_s6 + $0x110] sm:$0xff]  ;;  %v203_v5 = vld [vmem:[%s932_s6 + $0x118] sm:$0xff]  ;;  %p749_p10 = pnand %p748_p8, %p742_p4 }
  0x44   : > { %429 = vst [vmem:[%s965_s21 + $0x20] sm:$0xff] %v301_v17  ;;  %430 = vst [vmem:[%s965_s21 + $0x28] sm:$0xff] %v302_v18  ;;  %v311_v33 = vmul.f32 %v944_v6, %v182_v23  ;;  %v312_v34 = vmul.f32 %v944_v6, %v183_v28  ;;  %v313_v38 = vmul.f32 %v944_v6, %v184_v29  ;;  %v204_v10 = vld [vmem:[%s932_s6 + $0x120] sm:$0xff]  ;;  %v205_v11 = vld [vmem:[%s932_s6 + $0x128] sm:$0xff] }
  0x45   : > { %431 = vst [vmem:[%s965_s21 + $0x30] sm:$0xff] %v303_v19  ;;  %432 = vst [vmem:[%s965_s21 + $0x38] sm:$0xff] %v304_v20  ;;  %v314_v39 = vmul.f32 %v944_v6, %v185_v30  ;;  %v315_v40 = vmul.f32 %v944_v6, %v186_v35  ;;  %v316_v41 = vmul.f32 %v944_v6, %v187_v36  ;;  %v206_v12 = vld [vmem:[%s932_s6 + $0x130] sm:$0xff]  ;;  %v207_v16 = vld [vmem:[%s932_s6 + $0x138] sm:$0xff] }
  0x46   : > { %433 = vst [vmem:[%s965_s21 + $0x40] sm:$0xff] %v305_v24  ;;  %434 = vst [vmem:[%s965_s21 + $0x48] sm:$0xff] %v306_v25  ;;  %v317_v45 = vmul.f32 %v944_v6, %v188_v37  ;;  %v318_v46 = vmul.f32 %v944_v6, %v189_v42  ;;  %v319_v47 = vmul.f32 %v944_v6, %v190_v43  ;;  %v208_v17 = vld [vmem:[%s932_s6 + $0x140] sm:$0xff]  ;;  %v209_v18 = vld [vmem:[%s932_s6 + $0x148] sm:$0xff] }
  0x47   : > { %435 = vst [vmem:[%s965_s21 + $0x50] sm:$0xff] %v307_v26  ;;  %436 = vst [vmem:[%s965_s21 + $0x58] sm:$0xff] %v308_v27  ;;  %v320_v48 = vmul.f32 %v944_v6, %v191_v44  ;;  %v321_v52 = vmul.f32 %v944_v6, %v192_v49  ;;  %v322_v53 = vmul.f32 %v944_v6, %v193_v50  ;;  %v210_v22 = vld [vmem:[%s932_s6 + $0x150] sm:$0xff]  ;;  %v211_v23 = vld [vmem:[%s932_s6 + $0x158] sm:$0xff] }
  0x48   : > { %437 = vst [vmem:[%s965_s21 + $0x60] sm:$0xff] %v309_v31  ;;  %438 = vst [vmem:[%s965_s21 + $0x68] sm:$0xff] %v310_v32  ;;  %v323_v54 = vmul.f32 %v944_v6, %v194_v51  ;;  %v324_v58 = vmul.f32 %v944_v6, %v195_v55  ;;  %v325_v59 = vmul.f32 %v944_v6, %v196_v56  ;;  %v212_v24 = vld [vmem:[%s932_s6 + $0x160] sm:$0xff]  ;;  %v213_v28 = vld [vmem:[%s932_s6 + $0x168] sm:$0xff] }
  0x49   : > { %439 = vst [vmem:[%s965_s21 + $0x70] sm:$0xff] %v311_v33  ;;  %440 = vst [vmem:[%s965_s21 + $0x78] sm:$0xff] %v312_v34  ;;  %v326_v60 = vmul.f32 %v944_v6, %v197_v57  ;;  %v327_v0 = vmul.f32 %v944_v6, %v198_v61  ;;  %v328_v1 = vmul.f32 %v944_v6, %v199_v62  ;;  %v214_v29 = vld [vmem:[%s932_s6 + $0x170] sm:$0xff]  ;;  %v215_v30 = vld [vmem:[%s932_s6 + $0x178] sm:$0xff] }
  0x4a   : > { %441 = vst [vmem:[%s965_s21 + $0x80] sm:$0xff] %v313_v38  ;;  %442 = vst [vmem:[%s965_s21 + $0x88] sm:$0xff] %v314_v39  ;;  %v329_v2 = vmul.f32 %v944_v6, %v200_v63  ;;  %v330_v7 = vmul.f32 %v944_v6, %v201_v3  ;;  %v331_v8 = vmul.f32 %v944_v6, %v202_v4  ;;  %v216_v34 = vld [vmem:[%s932_s6 + $0x180] sm:$0xff]  ;;  %v217_v35 = vld [vmem:[%s932_s6 + $0x188] sm:$0xff] }
  0x4b   : > { %443 = vst [vmem:[%s965_s21 + $0x90] sm:$0xff] %v315_v40  ;;  %444 = vst [vmem:[%s965_s21 + $0x98] sm:$0xff] %v316_v41  ;;  %v332_v9 = vmul.f32 %v944_v6, %v203_v5  ;;  %v333_v13 = vmul.f32 %v944_v6, %v204_v10  ;;  %v334_v14 = vmul.f32 %v944_v6, %v205_v11  ;;  %v218_v36 = vld [vmem:[%s932_s6 + $0x190] sm:$0xff]  ;;  %v219_v40 = vld [vmem:[%s932_s6 + $0x198] sm:$0xff] }
  0x4c   : > { %445 = vst [vmem:[%s965_s21 + $0xa0] sm:$0xff] %v317_v45  ;;  %446 = vst [vmem:[%s965_s21 + $0xa8] sm:$0xff] %v318_v46  ;;  %v335_v15 = vmul.f32 %v944_v6, %v206_v12  ;;  %v336_v19 = vmul.f32 %v944_v6, %v207_v16  ;;  %v337_v20 = vmul.f32 %v944_v6, %v208_v17  ;;  %v220_v41 = vld [vmem:[%s932_s6 + $0x1a0] sm:$0xff]  ;;  %v221_v42 = vld [vmem:[%s932_s6 + $0x1a8] sm:$0xff] }
  0x4d   : > { %447 = vst [vmem:[%s965_s21 + $0xb0] sm:$0xff] %v319_v47  ;;  %448 = vst [vmem:[%s965_s21 + $0xb8] sm:$0xff] %v320_v48  ;;  %v338_v21 = vmul.f32 %v944_v6, %v209_v18  ;;  %v339_v25 = vmul.f32 %v944_v6, %v210_v22  ;;  %v340_v26 = vmul.f32 %v944_v6, %v211_v23  ;;  %v222_v46 = vld [vmem:[%s932_s6 + $0x1b0] sm:$0xff]  ;;  %v223_v47 = vld [vmem:[%s932_s6 + $0x1b8] sm:$0xff] }
  0x4e   : > { %449 = vst [vmem:[%s965_s21 + $0xc0] sm:$0xff] %v321_v52  ;;  %450 = vst [vmem:[%s965_s21 + $0xc8] sm:$0xff] %v322_v53  ;;  %v341_v27 = vmul.f32 %v944_v6, %v212_v24  ;;  %v342_v31 = vmul.f32 %v944_v6, %v213_v28  ;;  %v343_v32 = vmul.f32 %v944_v6, %v214_v29  ;;  %v224_v48 = vld [vmem:[%s932_s6 + $0x1c0] sm:$0xff]  ;;  %v225_v52 = vld [vmem:[%s932_s6 + $0x1c8] sm:$0xff] }
  0x4f   : > { %451 = vst [vmem:[%s965_s21 + $0xd0] sm:$0xff] %v323_v54  ;;  %452 = vst [vmem:[%s965_s21 + $0xd8] sm:$0xff] %v324_v58  ;;  %v344_v33 = vmul.f32 %v944_v6, %v215_v30  ;;  %v345_v37 = vmul.f32 %v944_v6, %v216_v34  ;;  %v346_v38 = vmul.f32 %v944_v6, %v217_v35  ;;  %v226_v53 = vld [vmem:[%s932_s6 + $0x1d0] sm:$0xff]  ;;  %v227_v54 = vld [vmem:[%s932_s6 + $0x1d8] sm:$0xff] }
  0x50   : > { %453 = vst [vmem:[%s965_s21 + $0xe0] sm:$0xff] %v325_v59  ;;  %454 = vst [vmem:[%s965_s21 + $0xe8] sm:$0xff] %v326_v60  ;;  %v347_v39 = vmul.f32 %v944_v6, %v218_v36  ;;  %v348_v43 = vmul.f32 %v944_v6, %v219_v40  ;;  %v349_v44 = vmul.f32 %v944_v6, %v220_v41  ;;  %v228_v58 = vld [vmem:[%s932_s6 + $0x1e0] sm:$0xff]  ;;  %v229_v59 = vld [vmem:[%s932_s6 + $0x1e8] sm:$0xff] }
  0x51   : > { %455 = vst [vmem:[%s965_s21 + $0xf0] sm:$0xff] %v327_v0  ;;  %456 = vst [vmem:[%s965_s21 + $0xf8] sm:$0xff] %v328_v1  ;;  %v350_v45 = vmul.f32 %v944_v6, %v221_v42  ;;  %v351_v49 = vmul.f32 %v944_v6, %v222_v46  ;;  %v352_v50 = vmul.f32 %v944_v6, %v223_v47  ;;  %v230_v60 = vld [vmem:[%s932_s6 + $0x1f0] sm:$0xff]  ;;  %v231_v0 = vld [vmem:[%s932_s6 + $0x1f8] sm:$0xff] }
  0x52   : > { %457 = vst [vmem:[%s965_s21 + $0x100] sm:$0xff] %v329_v2  ;;  %458 = vst [vmem:[%s965_s21 + $0x108] sm:$0xff] %v330_v7  ;;  %v353_v51 = vmul.f32 %v944_v6, %v224_v48  ;;  %v354_v55 = vmul.f32 %v944_v6, %v225_v52  ;;  %v355_v56 = vmul.f32 %v944_v6, %v226_v53  ;;  %v232_v1 = vld [vmem:[%s932_s6 + $0x200] sm:$0xff]  ;;  %v233_v2 = vld [vmem:[%s932_s6 + $0x208] sm:$0xff] }
  0x53   : > { %459 = vst [vmem:[%s965_s21 + $0x110] sm:$0xff] %v331_v8  ;;  %460 = vst [vmem:[%s965_s21 + $0x118] sm:$0xff] %v332_v9  ;;  %v356_v57 = vmul.f32 %v944_v6, %v227_v54  ;;  %v357_v61 = vmul.f32 %v944_v6, %v228_v58  ;;  %v358_v62 = vmul.f32 %v944_v6, %v229_v59  ;;  %v234_v7 = vld [vmem:[%s932_s6 + $0x210] sm:$0xff]  ;;  %v235_v8 = vld [vmem:[%s932_s6 + $0x218] sm:$0xff] }
  0x54   : > { %461 = vst [vmem:[%s965_s21 + $0x120] sm:$0xff] %v333_v13  ;;  %462 = vst [vmem:[%s965_s21 + $0x128] sm:$0xff] %v334_v14  ;;  %v359_v63 = vmul.f32 %v944_v6, %v230_v60  ;;  %v360_v3 = vmul.f32 %v944_v6, %v231_v0  ;;  %v361_v4 = vmul.f32 %v944_v6, %v232_v1  ;;  %v236_v9 = vld [vmem:[%s932_s6 + $0x220] sm:$0xff]  ;;  %v237_v13 = vld [vmem:[%s932_s6 + $0x228] sm:$0xff] }
  0x55   : > { %463 = vst [vmem:[%s965_s21 + $0x130] sm:$0xff] %v335_v15  ;;  %464 = vst [vmem:[%s965_s21 + $0x138] sm:$0xff] %v336_v19  ;;  %v362_v5 = vmul.f32 %v944_v6, %v233_v2  ;;  %v363_v10 = vmul.f32 %v944_v6, %v234_v7  ;;  %v364_v11 = vmul.f32 %v944_v6, %v235_v8  ;;  %v238_v14 = vld [vmem:[%s932_s6 + $0x230] sm:$0xff]  ;;  %v239_v15 = vld [vmem:[%s932_s6 + $0x238] sm:$0xff] }
  0x56   : > { %465 = vst [vmem:[%s965_s21 + $0x140] sm:$0xff] %v337_v20  ;;  %466 = vst [vmem:[%s965_s21 + $0x148] sm:$0xff] %v338_v21  ;;  %v365_v12 = vmul.f32 %v944_v6, %v236_v9  ;;  %v366_v16 = vmul.f32 %v944_v6, %v237_v13  ;;  %v367_v17 = vmul.f32 %v944_v6, %v238_v14  ;;  %v240_v19 = vld [vmem:[%s932_s6 + $0x240] sm:$0xff]  ;;  %v241_v20 = vld [vmem:[%s932_s6 + $0x248] sm:$0xff] }
  0x57   : > { %467 = vst [vmem:[%s965_s21 + $0x150] sm:$0xff] %v339_v25  ;;  %468 = vst [vmem:[%s965_s21 + $0x158] sm:$0xff] %v340_v26  ;;  %v368_v18 = vmul.f32 %v944_v6, %v239_v15  ;;  %v242_v21 = vld [vmem:[%s932_s6 + $0x250] sm:$0xff]  ;;  %v369_v22 = vmul.f32 %v944_v6, %v240_v19  ;;  %v370_v23 = vmul.f32 %v944_v6, %v241_v20  ;;  %v243_v25 = vld [vmem:[%s932_s6 + $0x258] sm:$0xff] }
  0x58   : > { %469 = vst [vmem:[%s965_s21 + $0x160] sm:$0xff] %v341_v27  ;;  %470 = vst [vmem:[%s965_s21 + $0x168] sm:$0xff] %v342_v31  ;;  %v371_v24 = vmul.f32 %v944_v6, %v242_v21  ;;  %v244_v26 = vld [vmem:[%s932_s6 + $0x260] sm:$0xff]  ;;  %v245_v27 = vld [vmem:[%s932_s6 + $0x268] sm:$0xff]  ;;  %v372_v28 = vmul.f32 %v944_v6, %v243_v25 }
  0x59   : > { %471 = vst [vmem:[%s965_s21 + $0x170] sm:$0xff] %v343_v32  ;;  %472 = vst [vmem:[%s965_s21 + $0x178] sm:$0xff] %v344_v33  ;;  %v373_v29 = vmul.f32 %v944_v6, %v244_v26  ;;  %v374_v30 = vmul.f32 %v944_v6, %v245_v27  ;;  %v246_v31 = vld [vmem:[%s932_s6 + $0x270] sm:$0xff]  ;;  %v247_v32 = vld [vmem:[%s932_s6 + $0x278] sm:$0xff] }
  0x5a   : > { %473 = vst [vmem:[%s965_s21 + $0x180] sm:$0xff] %v345_v37  ;;  %474 = vst [vmem:[%s965_s21 + $0x188] sm:$0xff] %v346_v38  ;;  %v248_v33 = vld [vmem:[%s932_s6 + $0x280] sm:$0xff]  ;;  %v375_v34 = vmul.f32 %v944_v6, %v246_v31  ;;  %v376_v35 = vmul.f32 %v944_v6, %v247_v32  ;;  %v249_v37 = vld [vmem:[%s932_s6 + $0x288] sm:$0xff] }
  0x5b   : > { %475 = vst [vmem:[%s965_s21 + $0x190] sm:$0xff] %v347_v39  ;;  %476 = vst [vmem:[%s965_s21 + $0x198] sm:$0xff] %v348_v43  ;;  %v377_v36 = vmul.f32 %v944_v6, %v248_v33  ;;  %v250_v38 = vld [vmem:[%s932_s6 + $0x290] sm:$0xff]  ;;  %v251_v39 = vld [vmem:[%s932_s6 + $0x298] sm:$0xff]  ;;  %v378_v40 = vmul.f32 %v944_v6, %v249_v37 }
  0x5c   : > { %477 = vst [vmem:[%s965_s21 + $0x1a0] sm:$0xff] %v349_v44  ;;  %478 = vst [vmem:[%s965_s21 + $0x1a8] sm:$0xff] %v350_v45  ;;  %v379_v41 = vmul.f32 %v944_v6, %v250_v38  ;;  %v380_v42 = vmul.f32 %v944_v6, %v251_v39  ;;  %v252_v43 = vld [vmem:[%s932_s6 + $0x2a0] sm:$0xff]  ;;  %v253_v44 = vld [vmem:[%s932_s6 + $0x2a8] sm:$0xff] }
  0x5d   : > { %479 = vst [vmem:[%s965_s21 + $0x1b0] sm:$0xff] %v351_v49  ;;  %480 = vst [vmem:[%s965_s21 + $0x1b8] sm:$0xff] %v352_v50  ;;  %v254_v45 = vld [vmem:[%s932_s6 + $0x2b0] sm:$0xff]  ;;  %v381_v46 = vmul.f32 %v944_v6, %v252_v43  ;;  %v382_v47 = vmul.f32 %v944_v6, %v253_v44  ;;  %v255_v49 = vld [vmem:[%s932_s6 + $0x2b8] sm:$0xff] }
  0x5e   : > { %481 = vst [vmem:[%s965_s21 + $0x1c0] sm:$0xff] %v353_v51  ;;  %482 = vst [vmem:[%s965_s21 + $0x1c8] sm:$0xff] %v354_v55  ;;  %v383_v48 = vmul.f32 %v944_v6, %v254_v45  ;;  %v256_v50 = vld [vmem:[%s932_s6 + $0x2c0] sm:$0xff]  ;;  %v257_v51 = vld [vmem:[%s932_s6 + $0x2c8] sm:$0xff]  ;;  %v384_v52 = vmul.f32 %v944_v6, %v255_v49 }
  0x5f   : > { %483 = vst [vmem:[%s965_s21 + $0x1d0] sm:$0xff] %v355_v56  ;;  %484 = vst [vmem:[%s965_s21 + $0x1d8] sm:$0xff] %v356_v57  ;;  %v385_v53 = vmul.f32 %v944_v6, %v256_v50  ;;  %v386_v54 = vmul.f32 %v944_v6, %v257_v51  ;;  %v258_v55 = vld [vmem:[%s932_s6 + $0x2d0] sm:$0xff]  ;;  %v259_v56 = vld [vmem:[%s932_s6 + $0x2d8] sm:$0xff] }
  0x60   : > { %485 = vst [vmem:[%s965_s21 + $0x1e0] sm:$0xff] %v357_v61  ;;  %486 = vst [vmem:[%s965_s21 + $0x1e8] sm:$0xff] %v358_v62  ;;  %v260_v57 = vld [vmem:[%s932_s6 + $0x2e0] sm:$0xff]  ;;  %v387_v58 = vmul.f32 %v944_v6, %v258_v55  ;;  %v388_v59 = vmul.f32 %v944_v6, %v259_v56  ;;  %v261_v61 = vld [vmem:[%s932_s6 + $0x2e8] sm:$0xff] }
  0x61   : > { %487 = vst [vmem:[%s965_s21 + $0x1f0] sm:$0xff] %v359_v63  ;;  %488 = vst [vmem:[%s965_s21 + $0x1f8] sm:$0xff] %v360_v3  ;;  %v389_v60 = vmul.f32 %v944_v6, %v260_v57  ;;  %v262_v62 = vld [vmem:[%s932_s6 + $0x2f0] sm:$0xff]  ;;  %v263_v63 = vld [vmem:[%s932_s6 + $0x2f8] sm:$0xff]  ;;  %v390_v0 = vmul.f32 %v944_v6, %v261_v61 }
  0x62   : > { %489 = vst [vmem:[%s965_s21 + $0x200] sm:$0xff] %v361_v4  ;;  %490 = vst [vmem:[%s965_s21 + $0x208] sm:$0xff] %v362_v5  ;;  %v391_v1 = vmul.f32 %v944_v6, %v262_v62  ;;  %v392_v2 = vmul.f32 %v944_v6, %v263_v63  ;;  %v264_v3 = vld [vmem:[%s932_s6 + $0x300] sm:$0xff]  ;;  %v265_v4 = vld [vmem:[%s932_s6 + $0x308] sm:$0xff] }
  0x63   : > { %491 = vst [vmem:[%s965_s21 + $0x210] sm:$0xff] %v363_v10  ;;  %492 = vst [vmem:[%s965_s21 + $0x218] sm:$0xff] %v364_v11  ;;  %v266_v5 = vld [vmem:[%s932_s6 + $0x310] sm:$0xff]  ;;  %v393_v7 = vmul.f32 %v944_v6, %v264_v3  ;;  %v394_v8 = vmul.f32 %v944_v6, %v265_v4  ;;  %v267_v10 = vld [vmem:[%s932_s6 + $0x318] sm:$0xff] }
  0x64   : > { %493 = vst [vmem:[%s965_s21 + $0x220] sm:$0xff] %v365_v12  ;;  %494 = vst [vmem:[%s965_s21 + $0x228] sm:$0xff] %v366_v16  ;;  %v395_v9 = vmul.f32 %v944_v6, %v266_v5  ;;  %v268_v11 = vld [vmem:[%s932_s6 + $0x320] sm:$0xff]  ;;  %v269_v12 = vld [vmem:[%s932_s6 + $0x328] sm:$0xff]  ;;  %v396_v13 = vmul.f32 %v944_v6, %v267_v10 }
  0x65   : > { %495 = vst [vmem:[%s965_s21 + $0x230] sm:$0xff] %v367_v17  ;;  %496 = vst [vmem:[%s965_s21 + $0x238] sm:$0xff] %v368_v18  ;;  %v397_v14 = vmul.f32 %v944_v6, %v268_v11  ;;  %v398_v15 = vmul.f32 %v944_v6, %v269_v12  ;;  %v270_v16 = vld [vmem:[%s932_s6 + $0x330] sm:$0xff]  ;;  %v271_v17 = vld [vmem:[%s932_s6 + $0x338] sm:$0xff] }
  0x66   : > { %497 = vst [vmem:[%s965_s21 + $0x240] sm:$0xff] %v369_v22  ;;  %498 = vst [vmem:[%s965_s21 + $0x248] sm:$0xff] %v370_v23  ;;  %v272_v18 = vld [vmem:[%s932_s6 + $0x340] sm:$0xff]  ;;  %v399_v19 = vmul.f32 %v944_v6, %v270_v16  ;;  %v400_v20 = vmul.f32 %v944_v6, %v271_v17  ;;  %v273_v22 = vld [vmem:[%s932_s6 + $0x348] sm:$0xff] }
  0x67   : > { %499 = vst [vmem:[%s965_s21 + $0x250] sm:$0xff] %v371_v24  ;;  %500 = vst [vmem:[%s965_s21 + $0x258] sm:$0xff] %v372_v28  ;;  %v401_v21 = vmul.f32 %v944_v6, %v272_v18  ;;  %v274_v23 = vld [vmem:[%s932_s6 + $0x350] sm:$0xff]  ;;  %v275_v24 = vld [vmem:[%s932_s6 + $0x358] sm:$0xff]  ;;  %v402_v25 = vmul.f32 %v944_v6, %v273_v22 }
  0x68   : > { %501 = vst [vmem:[%s965_s21 + $0x260] sm:$0xff] %v373_v29  ;;  %502 = vst [vmem:[%s965_s21 + $0x268] sm:$0xff] %v374_v30  ;;  %v403_v26 = vmul.f32 %v944_v6, %v274_v23  ;;  %v404_v27 = vmul.f32 %v944_v6, %v275_v24  ;;  %v276_v28 = vld [vmem:[%s932_s6 + $0x360] sm:$0xff]  ;;  %v277_v29 = vld [vmem:[%s932_s6 + $0x368] sm:$0xff] }
  0x69   : > { %503 = vst [vmem:[%s965_s21 + $0x270] sm:$0xff] %v375_v34  ;;  %504 = vst [vmem:[%s965_s21 + $0x278] sm:$0xff] %v376_v35  ;;  %v278_v30 = vld [vmem:[%s932_s6 + $0x370] sm:$0xff]  ;;  %v405_v31 = vmul.f32 %v944_v6, %v276_v28  ;;  %v406_v32 = vmul.f32 %v944_v6, %v277_v29  ;;  %v279_v34 = vld [vmem:[%s932_s6 + $0x378] sm:$0xff] }
  0x6a   : > { %505 = vst [vmem:[%s965_s21 + $0x280] sm:$0xff] %v377_v36  ;;  %506 = vst [vmem:[%s965_s21 + $0x288] sm:$0xff] %v378_v40  ;;  %v407_v33 = vmul.f32 %v944_v6, %v278_v30  ;;  %v280_v35 = vld [vmem:[%s932_s6 + $0x380] sm:$0xff]  ;;  %v281_v36 = vld [vmem:[%s932_s6 + $0x388] sm:$0xff]  ;;  %v408_v37 = vmul.f32 %v944_v6, %v279_v34 }
  0x6b   : > { %507 = vst [vmem:[%s965_s21 + $0x290] sm:$0xff] %v379_v41  ;;  %508 = vst [vmem:[%s965_s21 + $0x298] sm:$0xff] %v380_v42  ;;  %v409_v38 = vmul.f32 %v944_v6, %v280_v35  ;;  %v410_v39 = vmul.f32 %v944_v6, %v281_v36  ;;  %v282_v40 = vld [vmem:[%s932_s6 + $0x390] sm:$0xff]  ;;  %v283_v41 = vld [vmem:[%s932_s6 + $0x398] sm:$0xff] }
  0x6c   : > { %509 = vst [vmem:[%s965_s21 + $0x2a0] sm:$0xff] %v381_v46  ;;  %510 = vst [vmem:[%s965_s21 + $0x2a8] sm:$0xff] %v382_v47  ;;  %v284_v42 = vld [vmem:[%s932_s6 + $0x3a0] sm:$0xff]  ;;  %v411_v43 = vmul.f32 %v944_v6, %v282_v40  ;;  %v412_v44 = vmul.f32 %v944_v6, %v283_v41  ;;  %v285_v46 = vld [vmem:[%s932_s6 + $0x3a8] sm:$0xff] }
  0x6d   : > { %511 = vst [vmem:[%s965_s21 + $0x2b0] sm:$0xff] %v383_v48  ;;  %512 = vst [vmem:[%s965_s21 + $0x2b8] sm:$0xff] %v384_v52  ;;  %v413_v45 = vmul.f32 %v944_v6, %v284_v42  ;;  %v286_v47 = vld [vmem:[%s932_s6 + $0x3b0] sm:$0xff]  ;;  %v287_v48 = vld [vmem:[%s932_s6 + $0x3b8] sm:$0xff]  ;;  %v414_v49 = vmul.f32 %v944_v6, %v285_v46 }
  0x6e   : > { %513 = vst [vmem:[%s965_s21 + $0x2c0] sm:$0xff] %v385_v53  ;;  %514 = vst [vmem:[%s965_s21 + $0x2c8] sm:$0xff] %v386_v54  ;;  %v415_v50 = vmul.f32 %v944_v6, %v286_v47  ;;  %v416_v51 = vmul.f32 %v944_v6, %v287_v48  ;;  %v288_v52 = vld [vmem:[%s932_s6 + $0x3c0] sm:$0xff]  ;;  %v289_v53 = vld [vmem:[%s932_s6 + $0x3c8] sm:$0xff] }
  0x6f   : > { %515 = vst [vmem:[%s965_s21 + $0x2d0] sm:$0xff] %v387_v58  ;;  %516 = vst [vmem:[%s965_s21 + $0x2d8] sm:$0xff] %v388_v59  ;;  %v290_v54 = vld [vmem:[%s932_s6 + $0x3d0] sm:$0xff]  ;;  %v417_v55 = vmul.f32 %v944_v6, %v288_v52  ;;  %v418_v56 = vmul.f32 %v944_v6, %v289_v53  ;;  %v291_v58 = vld [vmem:[%s932_s6 + $0x3d8] sm:$0xff] }
  0x70   : > { %517 = vst [vmem:[%s965_s21 + $0x2e0] sm:$0xff] %v389_v60  ;;  %518 = vst [vmem:[%s965_s21 + $0x2e8] sm:$0xff] %v390_v0  ;;  %v419_v57 = vmul.f32 %v944_v6, %v290_v54  ;;  %v292_v59 = vld [vmem:[%s932_s6 + $0x3e0] sm:$0xff]  ;;  %v293_v60 = vld [vmem:[%s932_s6 + $0x3e8] sm:$0xff]  ;;  %v420_v61 = vmul.f32 %v944_v6, %v291_v58 }
  0x71   : > { %519 = vst [vmem:[%s965_s21 + $0x2f0] sm:$0xff] %v391_v1  ;;  %520 = vst [vmem:[%s965_s21 + $0x2f8] sm:$0xff] %v392_v2  ;;  %v421_v62 = vmul.f32 %v944_v6, %v292_v59  ;;  %v422_v63 = vmul.f32 %v944_v6, %v293_v60  ;;  %v294_v0 = vld [vmem:[%s932_s6 + $0x3f0] sm:$0xff]  ;;  %v295_v1 = vld [vmem:[%s932_s6 + $0x3f8] sm:$0xff] }
  0x72   : > { %521 = vst [vmem:[%s965_s21 + $0x300] sm:$0xff] %v393_v7  ;;  %522 = vst [vmem:[%s965_s21 + $0x308] sm:$0xff] %v394_v8  ;;  %v423_v2 = vmul.f32 %v944_v6, %v294_v0  ;;  %v424_v3 = vmul.f32 %v944_v6, %v295_v1 }
  0x73   : > { %523 = vst [vmem:[%s965_s21 + $0x310] sm:$0xff] %v395_v9  ;;  %524 = vst [vmem:[%s965_s21 + $0x318] sm:$0xff] %v396_v13 }
  0x74   : > { %525 = vst [vmem:[%s965_s21 + $0x320] sm:$0xff] %v397_v14  ;;  %526 = vst [vmem:[%s965_s21 + $0x328] sm:$0xff] %v398_v15 }
  0x75   : > { %527 = vst [vmem:[%s965_s21 + $0x330] sm:$0xff] %v399_v19  ;;  %528 = vst [vmem:[%s965_s21 + $0x338] sm:$0xff] %v400_v20 }
  0x76   : > { %529 = vst [vmem:[%s965_s21 + $0x340] sm:$0xff] %v401_v21  ;;  %530 = vst [vmem:[%s965_s21 + $0x348] sm:$0xff] %v402_v25 }
  0x77   : > { %531 = vst [vmem:[%s965_s21 + $0x350] sm:$0xff] %v403_v26  ;;  %532 = vst [vmem:[%s965_s21 + $0x358] sm:$0xff] %v404_v27 }
  0x78   : > { %533 = vst [vmem:[%s965_s21 + $0x360] sm:$0xff] %v405_v31  ;;  %534 = vst [vmem:[%s965_s21 + $0x368] sm:$0xff] %v406_v32 }
  0x79   : > { %535 = vst [vmem:[%s965_s21 + $0x370] sm:$0xff] %v407_v33  ;;  %536 = vst [vmem:[%s965_s21 + $0x378] sm:$0xff] %v408_v37 }
  0x7a   : > { %537 = vst [vmem:[%s965_s21 + $0x380] sm:$0xff] %v409_v38  ;;  %538 = vst [vmem:[%s965_s21 + $0x388] sm:$0xff] %v410_v39 }
  0x7b   : > { %539 = vst [vmem:[%s965_s21 + $0x390] sm:$0xff] %v411_v43  ;;  %540 = vst [vmem:[%s965_s21 + $0x398] sm:$0xff] %v412_v44 }
  0x7c   : > { %541 = vst [vmem:[%s965_s21 + $0x3a0] sm:$0xff] %v413_v45  ;;  %542 = vst [vmem:[%s965_s21 + $0x3a8] sm:$0xff] %v414_v49 }
  0x7d   : > { %543 = vst [vmem:[%s965_s21 + $0x3b0] sm:$0xff] %v415_v50  ;;  %544 = vst [vmem:[%s965_s21 + $0x3b8] sm:$0xff] %v416_v51 }
  0x7e   : > { %545 = vst [vmem:[%s965_s21 + $0x3c0] sm:$0xff] %v417_v55  ;;  %546 = vst [vmem:[%s965_s21 + $0x3c8] sm:$0xff] %v418_v56 }
  0x7f   : > { %547 = vst [vmem:[%s965_s21 + $0x3d0] sm:$0xff] %v419_v57  ;;  %548 = vst [vmem:[%s965_s21 + $0x3d8] sm:$0xff] %v420_v61 }
  0x80   : > { %549 = vst [vmem:[%s965_s21 + $0x3e0] sm:$0xff] %v421_v62  ;;  %550 = vst [vmem:[%s965_s21 + $0x3e8] sm:$0xff] %v422_v63 }
  0x81   : > { %551 = vst [vmem:[%s965_s21 + $0x3f0] sm:$0xff] %v423_v2  ;;  %552 = vst [vmem:[%s965_s21 + $0x3f8] sm:$0xff] %v424_v3 }
  0x82   : > { %752 = shalt.err (!%p749_p10)
}
  0x83   : > { %s753_s20 = scalar_lea.hbm %s1323_s8, 16384  ;;  %s757_s26 = scalar_lea.hbm %s1380_s2, 32768 }
  0x84   : > { %p754_p0 = scmp.ne.s32.totalorder %s1323_s8, %s753_s20  ;;  %p758_p1 = scmp.lt.s32.totalorder %s1323_s8, %s1380_s2 }
  0x85   : > { %p759_p3 = scmp.lt.s32.totalorder %s757_s26, %s753_s20 }
  0x86   : > { %p755_p2 = pnand %p754_p0, %p1389_p12 }
  0x87   : > { %p760_p6 = por %p759_p3, %p758_p1 }
  0x88   : > { %p756_p9 = pneg %p755_p2 }
  0x8a   : > { %p761_p11 = pnand %p760_p6, %p756_p9 }
  0x8c   : > { %764 = shalt.err (!%p761_p11)
}
  0x8d   : > { %s809_s6 = smov 1024   ;;  %s810_s29 = smov 64  }
  0x8e   : > { %663 = dma.vmem_to_hbm [thread:$0]  (%p1389_p12), %s1325_s5, 16384, %s1323_s8, %s554_s9, %s809_s6, %s809_s6, %s810_s29  }
  0x8f PF: > { %s583_s3 = sand.u32 1, %s791_s11   ;;  %p1390_p13 = scmp.ne.s32.totalorder %s1386_s23, 0 }
  0x90   : > { %p1391_p4 = scmp.ge.s32.totalorder %s803_s14, 2  ;;  %s584_s21 = scalar_lea.sflag [#allocation5], %s583_s3 }
  0x92   : > { %p670_p5 = pnand %p1391_p4, %p1390_p13 }
  0x94   : > { %p671_p7 = pneg %p670_p5 }
  0x96   : > { %786 = dma.done.wait (%p671_p7), %s584_s21, 16384  }
  0x97   : > { %788 = vsyncadd (%p671_p7), %s584_s21, 4294950912  ;;  %p16_p8 = scmp.ge.s32.totalorder %s854_s16, 4   ;;  %s1392_s11 = smov %s795_s12 }
  0x98   : > { %s1393_s12 = smov %s799_s13  ;;  %s1394_s13 = smov %s866_s19 }
  0x99   : > { %s1395_s14 = smov %s854_s16  ;;  %18 = sbr.rel (!%p16_p8) target bundleno = 7 (0x7), region = 73 }
  0x9e   :  { %589 = vsyncpa [#allocation4], 1 }
  0x9f   :  { %591 = vsyncpa [#allocation4 + $0x1], 1 }
  0xa0   :  { %592 = vsyncpa [#allocation5], 1 }
  0xa1   :  { %594 = vsyncpa [#allocation5 + $0x1], 1 }

</bundles_post_ra>
